<compile_context>
chip_gen: v7x
topology: tpu7x:2x2x1
jax: 0.10.0
libtpu: 0.0.40
codegen_flags: <defaults>
</compile_context>

<pallas_src>
import functools

import jax
import jax.numpy as jnp
from jax.experimental import pallas as pl
from jax.experimental.pallas import tpu as pltpu


def _round_up(x, mult):
    return ((x + mult - 1) // mult) * mult


def _pick_tn(n_pad):
    """Largest multiple of 128 that divides n_pad and is <= 512."""
    t = min(n_pad, 512)
    while n_pad % t:
        t -= 128
    return t


def _gram_plus_eye_kernel(*refs, scalar, tn, num_k):
    if len(refs) == 2:
        # Whole (n, n) output resident: lhs and rhs share one input stream.
        x_lhs_ref, o_ref = refs
        x_rhs_ref = x_lhs_ref
    else:
        x_lhs_ref, x_rhs_ref, o_ref = refs

    # Bind grid indices at the TOP LEVEL only (never inside pl.when bodies).
    j = pl.program_id(0)
    k = pl.program_id(1)

    @pl.when(k == 0)
    def _():
        o_ref[...] = jnp.zeros_like(o_ref)

    # Contract over the sample axis: (tm, n)^T @ (tm, tn) -> (n, tn) on the MXU,
    # accumulating in f32 directly into the resident output block.
    o_ref[...] += jax.lax.dot_general(
        x_lhs_ref[...], x_rhs_ref[...],
        dimension_numbers=(((0,), (0,)), ((), ())),
        preferred_element_type=jnp.float32,
    )

    @pl.when(k == num_k - 1)
    def _():
        rows = o_ref.shape[0]
        row = jax.lax.broadcasted_iota(jnp.int32, (rows, tn), 0)
        col = jax.lax.broadcasted_iota(jnp.int32, (rows, tn), 1) + j * tn
        eye = (row == col).astype(jnp.float32)
        o_ref[...] = eye + jnp.float32(scalar) * o_ref[...]


def _gram_plus_eye(x, scalar):
    """Compute M = I + scalar * X^T X with a Pallas kernel. Returns (n, n) f32."""
    m, n = x.shape
    n_pad = _round_up(n, 128)
    tn = _pick_tn(n_pad)

    # Pick the sample-axis tile so double-buffered inputs + resident/streamed
    # output stay well under the default scoped VMEM on every generation
    # (16/32/32 MiB on v5e/v6e/v7x).
    budget = 24 * 1024 * 1024
    out_bytes = 2 * n_pad * tn * 4
    tm = 1024
    while tm > 8 and out_bytes + 2 * 4 * tm * (n_pad + tn) > budget:
        tm //= 2
    tm = min(tm, _round_up(m, 8))
    m_pad = _round_up(m, tm)

    if (m_pad, n_pad) != (m, n):
        # Zero padding: extra zero rows/cols contribute nothing to X^T X.
        x = jnp.pad(x, ((0, m_pad - m), (0, n_pad - n)))

    num_j = n_pad // tn
    num_k = m_pad // tm
    shared = num_j == 1  # full output resident -> single pass over X

    kernel = functools.partial(
        _gram_plus_eye_kernel, scalar=float(scalar), tn=tn, num_k=num_k
    )

    lhs_spec = pl.BlockSpec((tm, n_pad), lambda j, k: (k, 0))
    rhs_spec = pl.BlockSpec((tm, tn), lambda j, k: (k, j))
    in_specs = [lhs_spec] if shared else [lhs_spec, rhs_spec]
    operands = (x,) if shared else (x, x)

    out = pl.pallas_call(
        kernel,
        out_shape=jax.ShapeDtypeStruct((n_pad, n_pad), jnp.float32),
        grid=(num_j, num_k),
        in_specs=in_specs,
        out_specs=pl.BlockSpec((n_pad, tn), lambda j, k: (0, j)),
        compiler_params=pltpu.CompilerParams(
            dimension_semantics=("parallel", "arbitrary"),
        ),
    )(*operands)

    return out[:n, :n]


def coding_length(x, eps=0.01):
    """JAX/Pallas equivalent of CodingLength.forward."""
    x = x.astype(jnp.float32)
    m, n = x.shape
    scalar = n / (eps * m)
    M = _gram_plus_eye(x, scalar)  # (n, n) = I + scalar * X^T X, computed on MXU
    # M is symmetric positive definite by construction, so use Cholesky:
    # logdet(M) = 2 * sum(log(diag(L))). Cheaper and more stable than LU slogdet.
    # TODO(synk): the Cholesky factorization itself has no clean Pallas TPU
    # equivalent; it runs in plain JAX on the small dense (n, n) matrix.
    L = jnp.linalg.cholesky(M)
    logdet = 2.0 * jnp.sum(jnp.log(jnp.diagonal(L)))
    return (m + n) * logdet / 2.0


if __name__ == "__main__":
    key = jax.random.PRNGKey(0)
    m, n = 256, 128  # m samples, n dimensions
    X = jax.random.normal(key, (m, n), dtype=jnp.float32)

    out = coding_length(X, eps=0.01)
    out = jax.block_until_ready(out)

    # Cross-check against a pure-JAX reference of the same math.
    scalar = n / (0.01 * m)
    M_ref = jnp.eye(n, dtype=jnp.float32) + scalar * (X.T @ X)
    ref = (m + n) * jnp.linalg.slogdet(M_ref)[1] / 2.0
    assert jnp.allclose(out, ref, rtol=1e-4, atol=1e-2), (out, ref)

    print("KERNEL_OK")
</pallas_src>

<mosaic_0001>
module attributes {stable_mosaic.version = 11 : i64} {
  func.func @_gram_plus_eye_kernel(%arg0: i32, %arg1: i32, %arg2: memref<256x128xf32, #tpu.memory_space<vmem>>, %arg3: memref<128x128xf32, #tpu.memory_space<vmem>>) attributes {dimension_semantics = [#tpu.dimension_semantics<parallel>, #tpu.dimension_semantics<arbitrary>], iteration_bounds = array<i64: 1, 1>, scalar_prefetch = 0 : i64, scratch_operands = 0 : i64, tpu.core_type = #tpu.core_type<tc>, window_params = [{transform_indices = @transform_0, window_bounds = array<i64: 256, 128>}, {transform_indices = @transform_1, window_bounds = array<i64: 128, 128>}]} {
    %c0_i32 = arith.constant 0 : i32
    %0 = arith.cmpi eq, %arg1, %c0_i32 : i32
    %1 = arith.extui %0 : i1 to i32
    %c0_i32_0 = arith.constant 0 : i32
    %2 = arith.cmpi ne, %1, %c0_i32_0 : i32
    scf.if %2 {
      %cst_10 = arith.constant 0.000000e+00 : f32
      %12 = vector.broadcast %cst_10 : f32 to vector<128x128xf32>
      %c0_11 = arith.constant 0 : index
      %c0_12 = arith.constant 0 : index
      %13 = vector.load %arg3[%c0_11, %c0_12] : memref<128x128xf32, #tpu.memory_space<vmem>>, vector<128x128xf32>
      tpu.vector_store %arg3[%c0_11, %c0_12], %12 {strides = array<i32>} : memref<128x128xf32, #tpu.memory_space<vmem>>, vector<128x128xf32>,
    } else {
    }
    %c0 = arith.constant 0 : index
    %c0_1 = arith.constant 0 : index
    %3 = vector.load %arg3[%c0, %c0_1] : memref<128x128xf32, #tpu.memory_space<vmem>>, vector<128x128xf32>
    %c0_2 = arith.constant 0 : index
    %c0_3 = arith.constant 0 : index
    %4 = vector.load %arg2[%c0_2, %c0_3] : memref<256x128xf32, #tpu.memory_space<vmem>>, vector<256x128xf32>
    %c0_4 = arith.constant 0 : index
    %c0_5 = arith.constant 0 : index
    %5 = vector.load %arg2[%c0_4, %c0_5] : memref<256x128xf32, #tpu.memory_space<vmem>>, vector<256x128xf32>
    %cst = arith.constant dense<0.000000e+00> : vector<128x128xf32>
    %6 = tpu.matmul %4, %5, %cst {dimension_numbers = #tpu.dot_dimension_numbers<[0], [0], [1], [1], [0, 1, 1, 1], [], []>} : vector<256x128xf32>, vector<256x128xf32>, vector<128x128xf32> -> vector<128x128xf32>
    %7 = arith.addf %3, %6 : vector<128x128xf32>
    %c0_6 = arith.constant 0 : index
    %c0_7 = arith.constant 0 : index
    %8 = vector.load %arg3[%c0_6, %c0_7] : memref<128x128xf32, #tpu.memory_space<vmem>>, vector<128x128xf32>
    tpu.vector_store %arg3[%c0_6, %c0_7], %7 {strides = array<i32>} : memref<128x128xf32, #tpu.memory_space<vmem>>, vector<128x128xf32>,
    %c0_i32_8 = arith.constant 0 : i32
    %9 = arith.cmpi eq, %arg1, %c0_i32_8 : i32
    %10 = arith.extui %9 : i1 to i32
    %c0_i32_9 = arith.constant 0 : i32
    %11 = arith.cmpi ne, %10, %c0_i32_9 : i32
    scf.if %11 {
      %12 = tpu.iota {dimensions = array<i32: 0>} : vector<128x128xi32>
      %13 = tpu.iota {dimensions = array<i32: 1>} : vector<128x128xi32>
      %c128_i32 = arith.constant 128 : i32
      %14 = arith.muli %arg0, %c128_i32 : i32
      %15 = vector.broadcast %14 : i32 to vector<128x128xi32>
      %16 = arith.addi %13, %15 : vector<128x128xi32>
      %17 = arith.cmpi eq, %12, %16 : vector<128x128xi32>
      %18 = arith.extui %17 : vector<128x128xi1> to vector<128x128xi32>
      %19 = arith.sitofp %18 : vector<128x128xi32> to vector<128x128xf32>
      %c0_10 = arith.constant 0 : index
      %c0_11 = arith.constant 0 : index
      %20 = vector.load %arg3[%c0_10, %c0_11] : memref<128x128xf32, #tpu.memory_space<vmem>>, vector<128x128xf32>
      %cst_12 = arith.constant 5.000000e+01 : f32
      %21 = vector.broadcast %cst_12 : f32 to vector<128x128xf32>
      %22 = arith.mulf %21, %20 : vector<128x128xf32>
      %23 = arith.addf %19, %22 : vector<128x128xf32>
      %c0_13 = arith.constant 0 : index
      %c0_14 = arith.constant 0 : index
      %24 = vector.load %arg3[%c0_13, %c0_14] : memref<128x128xf32, #tpu.memory_space<vmem>>, vector<128x128xf32>
      tpu.vector_store %arg3[%c0_13, %c0_14], %23 {strides = array<i32>} : memref<128x128xf32, #tpu.memory_space<vmem>>, vector<128x128xf32>,
    } else {
    }
    return
  }
  func.func @transform_0(%arg0: i32, %arg1: i32) -> (i32, i32) {
    %c0_i32 = arith.constant 0 : i32
    %c0_i32_0 = arith.constant 0 : i32
    return %arg1, %c0_i32 : i32, i32
  }
  func.func @transform_1(%arg0: i32, %arg1: i32) -> (i32, i32) {
    %c0_i32 = arith.constant 0 : i32
    %c0_i32_0 = arith.constant 0 : i32
    return %c0_i32, %arg0 : i32, i32
  }
}

</mosaic_0001>

<bundles_post_ra>
// kernel: tpu_custom_call.1
= control target key start
LH: loop header
LB: loop body
LE: loop exit
PB: predicated region body
PF: predicated region fallthrough
CT: control target
= control target key end

     0   :  { %6 = vsyncpa [#allocation3], 0  ;;  %s892_s0 = inlined_call_operand.hbm [shape: f32[256,128], index: 0, kind: input, shape index: {}]   ;;  %s893_s1 = inlined_call_operand.hbm [shape: f32[128,128], index: 1, kind: output, shape index: {}]  }
   0x1   :  { %7 = vsyncpa [#allocation4], 0  ;;  %s795_s6 = smov [#allocation2]   ;;  %s747_s10 = scalar_lea.hbm %s892_s0, 4096 }
   0x2   :  { %s13_s7 = sshll.u32 %s795_s6, 4  ;;  %p748_p0 = scmp.ne.s32.totalorder %s892_s0, %s747_s10  ;;  %s14_s7 = int_to_ptr.vmem [resolvable:$true] %s13_s7 }
   0x3   :  { %p751_p1 = scmp.lt.u32.totalorder %s747_s10, %s892_s0 }
   0x5   :  { %p753_p2 = pnand %p751_p1, %p748_p0 }
   0x7   :  { %756 = shalt.err (!%p753_p2)
}
   0x8   :  { %s757_s15 = scalar_lea.vmem %s14_s7, 4096  ;;  %p762_p4 = scmp.lt.s32.totalorder %s14_s7, %s14_s7 }
   0x9   :  { %p758_p3 = scmp.ne.s32.totalorder %s14_s7, %s757_s15  ;;  %p763_p5 = scmp.lt.s32.totalorder %s757_s15, %s757_s15 }
   0xb   :  { %p764_p6 = por %p763_p5, %p762_p4 }
   0xd   :  { %p765_p7 = pnand %p764_p6, %p758_p3 }
   0xf   :  { %768 = shalt.err (!%p765_p7)
}
  0x10   :  { %s796_s16 = smov 128   ;;  %s797_s17 = smov 8  }
  0x11   :  { %19 = dma.hbm_to_vmem [thread:$0]  %s892_s0, 4096, %s14_s7, [#allocation3], %s796_s16, %s796_s16, %s797_s17  }
  0x12   :  { %791 = dma.done.wait [#allocation3], 4096  }
  0x13   :  { %792 = vsyncadd [#allocation3], 4294963200  ;;  %v59_v0 = vld [vmem:[#allocation2] sm:$0xff]  ;;  %v60_v2 = vld [vmem:[#allocation2 + $0x8] sm:$0xff]  ;;  %s799_s0 = smov [#allocation5]  }
  0x14   :  { %v75_v1 = vld [vmem:[#allocation2 + $0x80] sm:$0xff]  ;;  %v76_v4 = vld [vmem:[#allocation2 + $0x88] sm:$0xff]  ;;  %v584_v5 = vpack.c.bf16 %v60_v2, %v59_v0  ;;  %v77_v6 = vld [vmem:[#allocation2 + $0x90] sm:$0xff]  ;;  %s474_s20 = sshll.u32 %s799_s0, 4  ;;  %s475_s20 = int_to_ptr.vmem [resolvable:$true] %s474_s20 }
  0x15   :  { %v635_v3 = vpack.i.bf16 %v59_v0, %v75_v1  ;;  %v78_v7 = vld [vmem:[#allocation2 + $0x98] sm:$0xff]  ;;  %v582_v8 = vpack.c.bf16 %v76_v4, %v75_v1  ;;  %v637_v9 = vpack.i.bf16 %v60_v2, %v76_v4  ;;  %v61_v11 = vld [vmem:[#allocation2 + $0x10] sm:$0xff]  ;;  %v79_v14 = vld [vmem:[#allocation2 + $0xa0] sm:$0xff]  ;;  %s769_s21 = scalar_lea.vmem %s475_s20, 2048  ;;  %p774_p9 = scmp.lt.s32.totalorder %s475_s20, %s475_s20 }
  0x16   :  { %v586_v10 = vpack.c.bf16 %v78_v7, %v77_v6  ;;  %v62_v12 = vld [vmem:[#allocation2 + $0x18] sm:$0xff]  ;;  %v80_v15 = vld [vmem:[#allocation2 + $0xa8] sm:$0xff]  ;;  %v639_v17 = vpack.i.bf16 %v61_v11, %v77_v6  ;;  %v63_v18 = vld [vmem:[#allocation2 + $0x20] sm:$0xff]  ;;  %p770_p8 = scmp.ne.s32.totalorder %s475_s20, %s769_s21  ;;  %p775_p10 = scmp.lt.s32.totalorder %s769_s21, %s769_s21 }
  0x17   :  { %636 = vxpose.xlu0.b32.start [1/16] %v635_v3, 128  ;;  %583 = vmatprep.subr.bf16.mxu0 %v582_v8  ;;  %v588_v13 = vpack.c.bf16 %v62_v12, %v61_v11  ;;  %v590_v16 = vpack.c.bf16 %v80_v15, %v79_v14  ;;  %v64_v19 = vld [vmem:[#allocation2 + $0x28] sm:$0xff]  ;;  %v81_v21 = vld [vmem:[#allocation2 + $0xb0] sm:$0xff]  ;;  %v82_v22 = vld [vmem:[#allocation2 + $0xb8] sm:$0xff]  ;;  %v641_v24 = vpack.i.bf16 %v62_v12, %v78_v7 }
  0x18   :  { %585 = vmatpush3.bf16.msra.mxu0 %v584_v5  ;;  %614 = vmatprep.subr.bf16.mxu1 %v582_v8  ;;  %v592_v20 = vpack.c.bf16 %v64_v19, %v63_v18  ;;  %v594_v23 = vpack.c.bf16 %v82_v22, %v81_v21  ;;  %v65_v25 = vld [vmem:[#allocation2 + $0x30] sm:$0xff]  ;;  %v66_v26 = vld [vmem:[#allocation2 + $0x38] sm:$0xff]  ;;  %v83_v28 = vld [vmem:[#allocation2 + $0xc0] sm:$0xff]  ;;  %v643_v31 = vpack.i.bf16 %v63_v18, %v79_v14  ;;  %p776_p11 = por %p775_p10, %p774_p9 }
  0x19   :  { %587 = vmatprep.subr.bf16.mxu0 %v586_v10  ;;  %622 = vmatpush3.bf16.msra.mxu1 %v584_v5  ;;  %v596_v27 = vpack.c.bf16 %v66_v26, %v65_v25  ;;  %v84_v29 = vld [vmem:[#allocation2 + $0xc8] sm:$0xff]  ;;  %v67_v32 = vld [vmem:[#allocation2 + $0x40] sm:$0xff]  ;;  %v85_v35 = vld [vmem:[#allocation2 + $0xd0] sm:$0xff]  ;;  %v645_v38 = vpack.i.bf16 %v64_v19, %v80_v15  ;;  %v647_v45 = vpack.i.bf16 %v65_v25, %v81_v21 }
  0x1a   :  { %615 = vmatprep.subr.bf16.mxu1 %v586_v10  ;;  %v598_v30 = vpack.c.bf16 %v84_v29, %v83_v28  ;;  %v68_v33 = vld [vmem:[#allocation2 + $0x48] sm:$0xff]  ;;  %v86_v36 = vld [vmem:[#allocation2 + $0xd8] sm:$0xff]  ;;  %v69_v39 = vld [vmem:[#allocation2 + $0x50] sm:$0xff]  ;;  %v649_v52 = vpack.i.bf16 %v66_v26, %v82_v22  ;;  %v651_v56 = vpack.i.bf16 %v67_v32, %v83_v28  ;;  %p777_p12 = pnand %p776_p11, %p770_p8 }
  0x1b   :  { %638 = vxpose.xlu0.b32.cont [2/16] %v637_v9, 128  ;;  %v600_v34 = vpack.c.bf16 %v68_v33, %v67_v32  ;;  %v602_v37 = vpack.c.bf16 %v86_v36, %v85_v35  ;;  %v70_v40 = vld [vmem:[#allocation2 + $0x58] sm:$0xff]  ;;  %v87_v42 = vld [vmem:[#allocation2 + $0xe0] sm:$0xff]  ;;  %v88_v43 = vld [vmem:[#allocation2 + $0xe8] sm:$0xff]  ;;  %v653_v57 = vpack.i.bf16 %v68_v33, %v84_v29  ;;  %v655_v58 = vpack.i.bf16 %v69_v39, %v85_v35 }
  0x1c   :  { %589 = vmatpush3.bf16.msra.mxu0 %v588_v13  ;;  %v604_v41 = vpack.c.bf16 %v70_v40, %v69_v39  ;;  %v606_v44 = vpack.c.bf16 %v88_v43, %v87_v42  ;;  %v71_v46 = vld [vmem:[#allocation2 + $0x60] sm:$0xff]  ;;  %v72_v47 = vld [vmem:[#allocation2 + $0x68] sm:$0xff]  ;;  %v89_v49 = vld [vmem:[#allocation2 + $0xf0] sm:$0xff]  ;;  %v657_v59 = vpack.i.bf16 %v70_v40, %v86_v36 }
  0x1d   :  { %591 = vmatprep.subr.bf16.mxu0 %v590_v16  ;;  %623 = vmatpush3.bf16.msra.mxu1 %v588_v13  ;;  %v608_v48 = vpack.c.bf16 %v72_v47, %v71_v46  ;;  %v90_v50 = vld [vmem:[#allocation2 + $0xf8] sm:$0xff]  ;;  %v73_v53 = vld [vmem:[#allocation2 + $0x70] sm:$0xff]  ;;  %v659_v60 = vpack.i.bf16 %v71_v46, %v87_v42  ;;  %v661_v61 = vpack.i.bf16 %v72_v47, %v88_v43 }
  0x1e   :  { %616 = vmatprep.subr.bf16.mxu1 %v590_v16  ;;  %v610_v51 = vpack.c.bf16 %v90_v50, %v89_v49  ;;  %v74_v54 = vld [vmem:[#allocation2 + $0x78] sm:$0xff]  ;;  %v663_v62 = vpack.i.bf16 %v73_v53, %v89_v49 }
  0x1f   :  { %640 = vxpose.xlu0.b32.cont [3/16] %v639_v17, 128  ;;  %v612_v55 = vpack.c.bf16 %v74_v54, %v73_v53  ;;  %v665_v63 = vpack.i.bf16 %v74_v54, %v90_v50 }
  0x20   :  { %593 = vmatpush3.bf16.msra.mxu0 %v592_v20 }
  0x21   :  { %595 = vmatprep.subr.bf16.mxu0 %v594_v23  ;;  %624 = vmatpush3.bf16.msra.mxu1 %v592_v20 }
  0x22   :  { %617 = vmatprep.subr.bf16.mxu1 %v594_v23 }
  0x23   :  { %642 = vxpose.xlu0.b32.cont [4/16] %v641_v24, 128 }
  0x24   :  { %597 = vmatpush3.bf16.msra.mxu0 %v596_v27 }
  0x25   :  { %599 = vmatprep.subr.bf16.mxu0 %v598_v30  ;;  %625 = vmatpush3.bf16.msra.mxu1 %v596_v27 }
  0x26   :  { %618 = vmatprep.subr.bf16.mxu1 %v598_v30 }
  0x27   :  { %644 = vxpose.xlu0.b32.cont [5/16] %v643_v31, 128 }
  0x28   :  { %601 = vmatpush3.bf16.msra.mxu0 %v600_v34 }
  0x29   :  { %603 = vmatprep.subr.bf16.mxu0 %v602_v37  ;;  %626 = vmatpush3.bf16.msra.mxu1 %v600_v34 }
  0x2a   :  { %619 = vmatprep.subr.bf16.mxu1 %v602_v37 }
  0x2b   :  { %646 = vxpose.xlu0.b32.cont [6/16] %v645_v38, 128 }
  0x2c   :  { %605 = vmatpush3.bf16.msra.mxu0 %v604_v41 }
  0x2d   :  { %607 = vmatprep.subr.bf16.mxu0 %v606_v44  ;;  %627 = vmatpush3.bf16.msra.mxu1 %v604_v41 }
  0x2e   :  { %620 = vmatprep.subr.bf16.mxu1 %v606_v44 }
  0x2f   :  { %648 = vxpose.xlu0.b32.cont [7/16] %v647_v45, 128 }
  0x30   :  { %609 = vmatpush3.bf16.msra.mxu0 %v608_v48 }
  0x31   :  { %611 = vmatprep.subr.bf16.mxu0 %v610_v51  ;;  %628 = vmatpush3.bf16.msra.mxu1 %v608_v48  ;;  %v335_v48 = vlaneseq }
  0x32   :  { %621 = vmatprep.subr.bf16.mxu1 %v610_v51 }
  0x33   :  { %650 = vxpose.xlu0.b32.cont [8/16] %v649_v52, 128  ;;  %v825_v49 = vshrl.u32 %v335_v48, 7  ;;  %v827_v50 = vand.u32 127, %v335_v48 }
  0x34   :  { %613 = vmatpush3.bf16.msra.mxu0 %v612_v55 }
  0x35   :  { %629 = vmatpush3.bf16.msra.mxu1 %v612_v55  ;;  %vm357_vm0 = vcmp.eq.s32.totalorder %v825_v49, %v827_v50  ;;  %v337_v54 = vadd.s32 8, %v825_v49 }
  0x37   :  { %652 = vxpose.xlu0.b32.cont [9/16] %v651_v56, 128  ;;  %v798_v56 = vmov 0.0   ;;  %vm358_vm1 = vcmp.eq.s32.totalorder %v337_v54, %v827_v50 }
  0x3b   :  { %654 = vxpose.xlu0.b32.cont [10/16] %v653_v57, 128  ;;  %v486_v57 = vsel %vm357_vm0, 1.0, %v798_v56 }
  0x3f   :  { %656 = vxpose.xlu0.b32.cont [11/16] %v655_v58, 128 }
  0x43   :  { %658 = vxpose.xlu0.b32.cont [12/16] %v657_v59, 128 }
  0x47   :  { %660 = vxpose.xlu0.b32.cont [13/16] %v659_v60, 128 }
  0x4b   :  { %662 = vxpose.xlu0.b32.cont [14/16] %v661_v61, 128  ;;  %v338_v61 = vadd.s32 16, %v825_v49 }
  0x4d   :  { %vm359_vm2 = vcmp.eq.s32.totalorder %v338_v61, %v827_v50 }
  0x4f   :  { %664 = vxpose.xlu0.b32.cont [15/16] %v663_v62, 128 }
  0x53   :  { %666 = vxpose.xlu0.b32.end [16/16] %v665_v63, 128 }
  0x97   :  { %v667_v0 = vpop.trf.xlu0 }
  0x98   :  { %v668_v1 = vunpack.i.l.bf16 %v667_v0  ;;  %v671_v2 = vunpack.i.h.bf16 %v667_v0  ;;  %v487_v0 = vsel %vm358_vm1, 1.0, %v798_v56 }
  0x9a   :  { %219 = vmatprep.mubr.f32.mxu0 %v668_v1 }
  0x9b   :  { %v672_v3 = vpop.trf.xlu0  ;;  %220 = vmatmul.mubr.f32.vlgmr.msra.gmra.mrb[0].mxu0 %v671_v2 }
  0x9c   :  { %v673_v4 = vunpack.i.l.bf16 %v672_v3  ;;  %v676_v5 = vunpack.i.h.bf16 %v672_v3 }
  0x9e   :  { %224 = vmatprep.mubr.f32.mxu0 %v673_v4  ;;  %v339_v4 = vadd.s32 24, %v825_v49 }
  0x9f   :  { %v677_v6 = vpop.trf.xlu0  ;;  %225 = vmatmul.mubr.f32.gmra.mrb[2].mxu0 %v676_v5 }
  0xa0   :  { %v678_v7 = vunpack.i.l.bf16 %v677_v6  ;;  %v681_v8 = vunpack.i.h.bf16 %v677_v6  ;;  %vm360_vm3 = vcmp.eq.s32.totalorder %v339_v4, %v827_v50 }
  0xa2   :  { %229 = vmatprep.mubr.f32.mxu0 %v678_v7  ;;  %v488_v7 = vsel %vm359_vm2, 1.0, %v798_v56 }
  0xa3   :  { %v682_v9 = vpop.trf.xlu0  ;;  %230 = vmatmul.mubr.f32.gmra.mrb[4].mxu0 %v681_v8 }
  0xa4   :  { %v683_v10 = vunpack.i.l.bf16 %v682_v9  ;;  %v686_v11 = vunpack.i.h.bf16 %v682_v9 }
  0xa6   :  { %234 = vmatprep.mubr.f32.mxu0 %v683_v10 }
  0xa7   :  { %v687_v12 = vpop.trf.xlu0  ;;  %235 = vmatmul.mubr.f32.gmra.mrb[6].mxu0 %v686_v11  ;;  %v340_v11 = vadd.s32 32, %v825_v49 }
  0xa8   :  { %v688_v13 = vunpack.i.l.bf16 %v687_v12  ;;  %v691_v14 = vunpack.i.h.bf16 %v687_v12 }
  0xa9   :  { %vm361_vm4 = vcmp.eq.s32.totalorder %v340_v11, %v827_v50 }
  0xaa   :  { %239 = vmatprep.mubr.f32.mxu0 %v688_v13 }
  0xab   :  { %v692_v15 = vpop.trf.xlu0  ;;  %240 = vmatmul.mubr.f32.gmra.mrb[8].mxu0 %v691_v14  ;;  %v489_v14 = vsel %vm360_vm3, 1.0, %v798_v56 }
  0xac   :  { %v693_v16 = vunpack.i.l.bf16 %v692_v15  ;;  %v696_v17 = vunpack.i.h.bf16 %v692_v15 }
  0xae   :  { %244 = vmatprep.mubr.f32.mxu0 %v693_v16 }
  0xaf   :  { %v697_v18 = vpop.trf.xlu0  ;;  %245 = vmatmul.mubr.f32.gmra.mrb[10].mxu0 %v696_v17 }
  0xb0   :  { %v698_v19 = vunpack.i.l.bf16 %v697_v18  ;;  %v701_v20 = vunpack.i.h.bf16 %v697_v18  ;;  %v341_v18 = vadd.s32 40, %v825_v49 }
  0xb2   :  { %249 = vmatprep.mubr.f32.mxu0 %v698_v19  ;;  %vm362_vm5 = vcmp.eq.s32.totalorder %v341_v18, %v827_v50 }
  0xb3   :  { %v702_v21 = vpop.trf.xlu0  ;;  %250 = vmatmul.mubr.f32.gmra.mrb[12].mxu0 %v701_v20 }
  0xb4   :  { %v703_v22 = vunpack.i.l.bf16 %v702_v21  ;;  %v706_v23 = vunpack.i.h.bf16 %v702_v21  ;;  %v490_v21 = vsel %vm361_vm4, 1.0, %v798_v56 }
  0xb6   :  { %254 = vmatprep.mubr.f32.mxu0 %v703_v22 }
  0xb7   :  { %v707_v24 = vpop.trf.xlu0  ;;  %255 = vmatmul.mubr.f32.gmra.mrb[14].mxu0 %v706_v23 }
  0xb8   :  { %v708_v25 = vunpack.i.l.bf16 %v707_v24  ;;  %v711_v26 = vunpack.i.h.bf16 %v707_v24 }
  0xba   :  { %259 = vmatprep.mubr.f32.mxu1 %v708_v25  ;;  %v342_v25 = vadd.s32 48, %v825_v49 }
  0xbb   :  { %v712_v27 = vpop.trf.xlu0  ;;  %260 = vmatmul.mubr.f32.vlgmr.msra.gmra.mrb[0].mxu1 %v711_v26 }
  0xbc   :  { %v713_v28 = vunpack.i.l.bf16 %v712_v27  ;;  %v716_v29 = vunpack.i.h.bf16 %v712_v27  ;;  %vm363_vm6 = vcmp.eq.s32.totalorder %v342_v25, %v827_v50 }
  0xbe   :  { %264 = vmatprep.mubr.f32.mxu1 %v713_v28  ;;  %v491_v28 = vsel %vm362_vm5, 1.0, %v798_v56 }
  0xbf   :  { %v717_v30 = vpop.trf.xlu0  ;;  %265 = vmatmul.mubr.f32.gmra.mrb[2].mxu1 %v716_v29 }
  0xc0   :  { %v718_v31 = vunpack.i.l.bf16 %v717_v30  ;;  %v721_v32 = vunpack.i.h.bf16 %v717_v30 }
  0xc2   :  { %269 = vmatprep.mubr.f32.mxu1 %v718_v31 }
  0xc3   :  { %v722_v33 = vpop.trf.xlu0  ;;  %270 = vmatmul.mubr.f32.gmra.mrb[4].mxu1 %v721_v32  ;;  %v343_v32 = vadd.s32 56, %v825_v49 }
  0xc4   :  { %v723_v34 = vunpack.i.l.bf16 %v722_v33  ;;  %v726_v35 = vunpack.i.h.bf16 %v722_v33 }
  0xc5   :  { %vm364_vm7 = vcmp.eq.s32.totalorder %v343_v32, %v827_v50 }
  0xc6   :  { %274 = vmatprep.mubr.f32.mxu1 %v723_v34 }
  0xc7   :  { %v727_v36 = vpop.trf.xlu0  ;;  %275 = vmatmul.mubr.f32.gmra.mrb[6].mxu1 %v726_v35  ;;  %v492_v35 = vsel %vm363_vm6, 1.0, %v798_v56 }
  0xc8   :  { %v728_v37 = vunpack.i.l.bf16 %v727_v36  ;;  %v731_v38 = vunpack.i.h.bf16 %v727_v36 }
  0xca   :  { %279 = vmatprep.mubr.f32.mxu1 %v728_v37 }
  0xcb   :  { %v732_v39 = vpop.trf.xlu0  ;;  %280 = vmatmul.mubr.f32.gmra.mrb[8].mxu1 %v731_v38 }
  0xcc   :  { %v733_v40 = vunpack.i.l.bf16 %v732_v39  ;;  %v736_v41 = vunpack.i.h.bf16 %v732_v39  ;;  %v344_v39 = vadd.s32 64, %v825_v49 }
  0xce   :  { %284 = vmatprep.mubr.f32.mxu1 %v733_v40  ;;  %vm365_vm8 = vcmp.eq.s32.totalorder %v344_v39, %v827_v50 }
  0xcf   :  { %v737_v42 = vpop.trf.xlu0  ;;  %285 = vmatmul.mubr.f32.gmra.mrb[10].mxu1 %v736_v41 }
  0xd0   :  { %v738_v43 = vunpack.i.l.bf16 %v737_v42  ;;  %v741_v44 = vunpack.i.h.bf16 %v737_v42  ;;  %v493_v42 = vsel %vm364_vm7, 1.0, %v798_v56 }
  0xd2   :  { %289 = vmatprep.mubr.f32.mxu1 %v738_v43 }
  0xd3   :  { %v742_v45 = vpop.trf.xlu0  ;;  %290 = vmatmul.mubr.f32.gmra.mrb[12].mxu1 %v741_v44 }
  0xd4   :  { %v746_v46 = vunpack.i.h.bf16 %v742_v45  ;;  %v743_v47 = vunpack.i.l.bf16 %v742_v45 }
  0xd6   :  { %294 = vmatprep.mubr.f32.mxu1 %v743_v47 }
  0xd7   :  { %295 = vmatmul.mubr.f32.gmra.mrb[14].mxu1 %v746_v46  ;;  %v345_v46 = vadd.s32 72, %v825_v49 }
  0xd9   :  { %vm366_vm9 = vcmp.eq.s32.totalorder %v345_v46, %v827_v50 }
 0x16e   :  { %v534_v51 = vpop.f32.mrb[0].mxu0 }
 0x16f   :  { %v535_v52 = vpop.f32.mrb[1].mxu0 }
 0x170   :  { %v536_v53 = vadd.f32 %v535_v52, %v534_v51  ;;  %v494_v51 = vsel %vm365_vm8, 1.0, %v798_v56 }
 0x172   :  { %v537_v55 = vpop.f32.mrb[2].mxu0  ;;  %v421_v59 = vmul.f32 50.0, %v536_v53 }
 0x173   :  { %v538_v58 = vpop.f32.mrb[3].mxu0 }
 0x174   :  { %v539_v60 = vadd.f32 %v538_v58, %v537_v55  ;;  %v437_v62 = vadd.f32 %v486_v57, %v421_v59  ;;  %v346_v55 = vadd.s32 80, %v825_v49  ;;  %v495_v59 = vsel %vm366_vm9, 1.0, %v798_v56 }
 0x176   :  { %v540_v63 = vpop.f32.mrb[4].mxu0  ;;  %453 = vst [vmem:[#allocation5] sm:$0xff] %v437_v62  ;;  %v422_v2 = vmul.f32 50.0, %v539_v60  ;;  %vm367_vm10 = vcmp.eq.s32.totalorder %v346_v55, %v827_v50 }
 0x177   :  { %v541_v1 = vpop.f32.mrb[5].mxu0 }
 0x178   :  { %v542_v3 = vadd.f32 %v541_v1, %v540_v63  ;;  %v438_v5 = vadd.f32 %v487_v0, %v422_v2  ;;  %v347_v63 = vadd.s32 88, %v825_v49  ;;  %v496_v2 = vsel %vm367_vm10, 1.0, %v798_v56 }
 0x17a   :  { %v543_v6 = vpop.f32.mrb[6].mxu0  ;;  %454 = vst [vmem:[#allocation5 + $0x8] sm:$0xff] %v438_v5  ;;  %v423_v9 = vmul.f32 50.0, %v542_v3  ;;  %vm368_vm11 = vcmp.eq.s32.totalorder %v347_v63, %v827_v50 }
 0x17b   :  { %v544_v8 = vpop.f32.mrb[7].mxu0 }
 0x17c   :  { %v545_v10 = vadd.f32 %v544_v8, %v543_v6  ;;  %v439_v12 = vadd.f32 %v488_v7, %v423_v9  ;;  %v348_v6 = vadd.s32 96, %v825_v49  ;;  %v497_v9 = vsel %vm368_vm11, 1.0, %v798_v56 }
 0x17e   :  { %v546_v13 = vpop.f32.mrb[8].mxu0  ;;  %455 = vst [vmem:[#allocation5 + $0x10] sm:$0xff] %v439_v12  ;;  %v424_v16 = vmul.f32 50.0, %v545_v10  ;;  %vm369_vm12 = vcmp.eq.s32.totalorder %v348_v6, %v827_v50 }
 0x17f   :  { %v547_v15 = vpop.f32.mrb[9].mxu0 }
 0x180   :  { %v548_v17 = vadd.f32 %v547_v15, %v546_v13  ;;  %v440_v19 = vadd.f32 %v489_v14, %v424_v16  ;;  %v349_v13 = vadd.s32 104, %v825_v49  ;;  %v498_v16 = vsel %vm369_vm12, 1.0, %v798_v56 }
 0x182   :  { %v549_v20 = vpop.f32.mrb[10].mxu0  ;;  %456 = vst [vmem:[#allocation5 + $0x18] sm:$0xff] %v440_v19  ;;  %v425_v23 = vmul.f32 50.0, %v548_v17  ;;  %vm370_vm13 = vcmp.eq.s32.totalorder %v349_v13, %v827_v50 }
 0x183   :  { %v550_v22 = vpop.f32.mrb[11].mxu0 }
 0x184   :  { %v551_v24 = vadd.f32 %v550_v22, %v549_v20  ;;  %v441_v26 = vadd.f32 %v490_v21, %v425_v23  ;;  %v350_v20 = vadd.s32 112, %v825_v49  ;;  %v499_v23 = vsel %vm370_vm13, 1.0, %v798_v56 }
 0x186   :  { %v552_v27 = vpop.f32.mrb[12].mxu0  ;;  %457 = vst [vmem:[#allocation5 + $0x20] sm:$0xff] %v441_v26  ;;  %v426_v30 = vmul.f32 50.0, %v551_v24  ;;  %vm371_vm14 = vcmp.eq.s32.totalorder %v350_v20, %v827_v50 }
 0x187   :  { %v553_v29 = vpop.f32.mrb[13].mxu0 }
 0x188   :  { %v554_v31 = vadd.f32 %v553_v29, %v552_v27  ;;  %v442_v33 = vadd.f32 %v491_v28, %v426_v30  ;;  %v351_v27 = vadd.s32 120, %v825_v49  ;;  %v500_v30 = vsel %vm371_vm14, 1.0, %v798_v56 }
 0x18a   :  { %v555_v34 = vpop.f32.mrb[14].mxu0  ;;  %458 = vst [vmem:[#allocation5 + $0x28] sm:$0xff] %v442_v33  ;;  %v427_v37 = vmul.f32 50.0, %v554_v31  ;;  %vm372_vm15 = vcmp.eq.s32.totalorder %v351_v27, %v827_v50 }
 0x18b   :  { %v556_v36 = vpop.f32.mrb[15].mxu0 }
 0x18c   :  { %v557_v38 = vadd.f32 %v556_v36, %v555_v34  ;;  %v443_v40 = vadd.f32 %v492_v35, %v427_v37  ;;  %v501_v35 = vsel %vm372_vm15, 1.0, %v798_v56 }
 0x18e   :  { %v558_v41 = vpop.f32.mrb[0].mxu1  ;;  %459 = vst [vmem:[#allocation5 + $0x30] sm:$0xff] %v443_v40  ;;  %v428_v44 = vmul.f32 50.0, %v557_v38 }
 0x18f   :  { %v559_v43 = vpop.f32.mrb[1].mxu1 }
 0x190   :  { %v560_v45 = vadd.f32 %v559_v43, %v558_v41  ;;  %v444_v47 = vadd.f32 %v493_v42, %v428_v44 }
 0x192   :  { %v561_v48 = vpop.f32.mrb[2].mxu1  ;;  %460 = vst [vmem:[#allocation5 + $0x38] sm:$0xff] %v444_v47  ;;  %v429_v53 = vmul.f32 50.0, %v560_v45 }
 0x193   :  { %v562_v52 = vpop.f32.mrb[3].mxu1 }
 0x194   :  { %v563_v54 = vadd.f32 %v562_v52, %v561_v48  ;;  %v445_v57 = vadd.f32 %v494_v51, %v429_v53 }
 0x196   :  { %v564_v58 = vpop.f32.mrb[4].mxu1  ;;  %461 = vst [vmem:[#allocation5 + $0x40] sm:$0xff] %v445_v57  ;;  %v430_v61 = vmul.f32 50.0, %v563_v54 }
 0x197   :  { %v565_v60 = vpop.f32.mrb[5].mxu1 }
 0x198   :  { %v566_v62 = vadd.f32 %v565_v60, %v564_v58  ;;  %v446_v0 = vadd.f32 %v495_v59, %v430_v61 }
 0x19a   :  { %v567_v1 = vpop.f32.mrb[6].mxu1  ;;  %462 = vst [vmem:[#allocation5 + $0x48] sm:$0xff] %v446_v0  ;;  %v431_v4 = vmul.f32 50.0, %v566_v62 }
 0x19b   :  { %v568_v3 = vpop.f32.mrb[7].mxu1 }
 0x19c   :  { %v569_v5 = vadd.f32 %v568_v3, %v567_v1  ;;  %v447_v7 = vadd.f32 %v496_v2, %v431_v4 }
 0x19e   :  { %v570_v8 = vpop.f32.mrb[8].mxu1  ;;  %463 = vst [vmem:[#allocation5 + $0x50] sm:$0xff] %v447_v7  ;;  %v432_v11 = vmul.f32 50.0, %v569_v5 }
 0x19f   :  { %v571_v10 = vpop.f32.mrb[9].mxu1 }
 0x1a0   :  { %v572_v12 = vadd.f32 %v571_v10, %v570_v8  ;;  %v448_v14 = vadd.f32 %v497_v9, %v432_v11 }
 0x1a2   :  { %v573_v15 = vpop.f32.mrb[10].mxu1  ;;  %464 = vst [vmem:[#allocation5 + $0x58] sm:$0xff] %v448_v14  ;;  %v433_v18 = vmul.f32 50.0, %v572_v12 }
 0x1a3   :  { %v574_v17 = vpop.f32.mrb[11].mxu1 }
 0x1a4   :  { %v575_v19 = vadd.f32 %v574_v17, %v573_v15  ;;  %v449_v21 = vadd.f32 %v498_v16, %v433_v18 }
 0x1a6   :  { %v576_v22 = vpop.f32.mrb[12].mxu1  ;;  %465 = vst [vmem:[#allocation5 + $0x60] sm:$0xff] %v449_v21  ;;  %v434_v25 = vmul.f32 50.0, %v575_v19 }
 0x1a7   :  { %v577_v24 = vpop.f32.mrb[13].mxu1 }
 0x1a8   :  { %v578_v26 = vadd.f32 %v577_v24, %v576_v22  ;;  %v450_v28 = vadd.f32 %v499_v23, %v434_v25 }
 0x1aa   :  { %v579_v29 = vpop.f32.mrb[14].mxu1  ;;  %466 = vst [vmem:[#allocation5 + $0x68] sm:$0xff] %v450_v28  ;;  %v435_v32 = vmul.f32 50.0, %v578_v26 }
 0x1ab   :  { %v580_v31 = vpop.f32.mrb[15].mxu1 }
 0x1ac   :  { %v581_v33 = vadd.f32 %v580_v31, %v579_v29  ;;  %v451_v34 = vadd.f32 %v500_v30, %v435_v32 }
 0x1ae   :  { %467 = vst [vmem:[#allocation5 + $0x70] sm:$0xff] %v451_v34  ;;  %v436_v36 = vmul.f32 50.0, %v581_v33 }
 0x1b0   :  { %v452_v37 = vadd.f32 %v501_v35, %v436_v36 }
 0x1b2   :  { %468 = vst [vmem:[#allocation5 + $0x78] sm:$0xff] %v452_v37 }
 0x1b3   :  { %780 = shalt.err (!%p777_p12)
}
 0x1b4   :  { %s781_s24 = scalar_lea.hbm %s893_s1, 2048 }
 0x1b5   :  { %p782_p13 = scmp.ne.s32.totalorder %s893_s1, %s781_s24  ;;  %p785_p0 = scmp.lt.u32.totalorder %s781_s24, %s893_s1 }
 0x1b7   :  { %p787_p1 = pnand %p785_p0, %p782_p13 }
 0x1b9   :  { %790 = shalt.err (!%p787_p1)
}
 0x1ba   :  { %480 = dma.vmem_to_hbm [thread:$0]  %s475_s20, 2048, %s893_s1, [#allocation4], %s796_s16, %s796_s16, %s797_s17  }
 0x1bb   :  { %793 = dma.done.wait [#allocation4], 2048  }
 0x1bc   :  { %794 = vsyncadd [#allocation4], 4294965248 }
 0x1bd   :  { %484 = vsyncpa [#allocation3], 1 }
 0x1be   :  { %485 = vsyncpa [#allocation4], 1 }

</bundles_post_ra>
